<compile_context>
chip_gen: v7x
topology: tpu7x:2x2x1
jax: 0.10.0
libtpu: 0.0.40
codegen_flags: <defaults>
</compile_context>

<pallas_src>
import jax
import jax.numpy as jnp
from jax.experimental import pallas as pl
from jax.experimental.pallas import tpu as pltpu

_LANES = 1024                     # lane-dense last dim (multiple of 128)
_MAX_ROWS_PER_TILE = 1024         # up to 4 MiB f32 / 2 MiB bf16 per tile
_MIN_PALLAS_ELEMS = 256 * 1024    # below this (or ragged) fused jnp is strictly better
_VMEM_LIMIT_BYTES = 32 * 1024 * 1024  # 2x(in+out) double-buffered 4 MiB tiles = 16 MiB + headroom


def _h_sigmoid_math(x):
    y = jnp.clip(x + jnp.asarray(3.0, x.dtype),
                 jnp.asarray(0.0, x.dtype),
                 jnp.asarray(6.0, x.dtype))
    # NOTE: multiplying by dtype-rounded 1/6 (instead of a true divide) can
    # differ by ~1 ulp for low-precision dtypes; acceptable vs the reference.
    return y * jnp.asarray(1.0 / 6.0, x.dtype)


def _h_sigmoid_kernel(x_ref, o_ref):
    # relu6(x + 3) * (1/6) -- pure VPU elementwise: add, clamp, multiply.
    o_ref[...] = _h_sigmoid_math(x_ref[...])


def _round_up(v, m):
    return ((v + m - 1) // m) * m


def h_sigmoid(x: jax.Array, *, donate_input: bool = False) -> jax.Array:
    """Elementwise hard-sigmoid, any shape/dtype (NCHW in MobileNetV2)."""
    n = x.size

    # Fast fallback: small or lane-ragged tensors.  A fused XLA elementwise op
    # is already 1 HBM read + 1 write; the Pallas path would need pad/slice
    # copies (or a concat) to build a lane-dense slab, which is strictly worse
    # for a memory-bound op.  This also covers the SE-block (N, C, 1, 1) case.
    if n < _MIN_PALLAS_ELEMS or (n % _LANES) != 0:
        return _h_sigmoid_math(x)

    rows = n // _LANES                   # >= 256 given the threshold
    x2 = x.reshape(rows, _LANES)         # contiguous reshape: no HBM copy

    # Largest tile <= _MAX_ROWS_PER_TILE that still yields >= 2 grid steps
    # (megacore balance on v7x); multiple of 32 sublanes so f32/bf16/int8 all
    # stay packed-aligned.  A partial last block is edge-masked by Pallas.
    rows_per_tile = min(_MAX_ROWS_PER_TILE, _round_up(pl.cdiv(rows, 2), 32))
    num_tiles = pl.cdiv(rows, rows_per_tile)

    itemsize = jnp.dtype(x.dtype).itemsize
    out = pl.pallas_call(
        _h_sigmoid_kernel,
        out_shape=jax.ShapeDtypeStruct((rows, _LANES), x.dtype),
        grid_spec=pltpu.PrefetchScalarGridSpec(
            num_scalar_prefetch=0,
            grid=(num_tiles,),
            in_specs=[pl.BlockSpec((rows_per_tile, _LANES), lambda i: (i, 0))],
            out_specs=pl.BlockSpec((rows_per_tile, _LANES), lambda i: (i, 0)),
        ),
        compiler_params=pltpu.CompilerParams(
            dimension_semantics=("parallel",),
            vmem_limit_bytes=_VMEM_LIMIT_BYTES,
        ),
        cost_estimate=pl.CostEstimate(
            flops=4 * n, transcendentals=0, bytes_accessed=2 * n * itemsize),
        # Opt-in HBM buffer reuse when the caller knows the pre-activation is
        # dead after this call (saves the output allocation; bandwidth same).
        input_output_aliases=({0: 0} if donate_input else {}),
    )(x2)

    return out.reshape(x.shape)


if __name__ == "__main__":
    key = jax.random.PRNGKey(0)
    k1, k2 = jax.random.split(key)

    # Small NCHW input consistent with the module's usage (takes the fused-jnp
    # fallback path, as intended for tiny activations).
    x_small = jax.random.normal(k1, (2, 4, 16, 16), dtype=jnp.float32) * 4.0
    # Activation-map-sized input that exercises the Pallas path
    # (2*32*64*64 = 262144 elements, lane-divisible -> (256, 1024) slab).
    x_large = jax.random.normal(k2, (2, 32, 64, 64), dtype=jnp.float32) * 4.0

    def ref(v):
        return jnp.clip(v + 3.0, 0.0, 6.0) / 6.0

    y_small = jax.block_until_ready(h_sigmoid(x_small))
    y_large = jax.block_until_ready(h_sigmoid(x_large))

    assert y_small.shape == x_small.shape and y_small.dtype == x_small.dtype
    assert y_large.shape == x_large.shape and y_large.dtype == x_large.dtype
    assert jnp.allclose(y_small, ref(x_small), atol=1e-6, rtol=1e-6)
    assert jnp.allclose(y_large, ref(x_large), atol=1e-6, rtol=1e-6)

    print("KERNEL_OK")
</pallas_src>

<mosaic_0001>
module attributes {stable_mosaic.version = 11 : i64} {
  func.func @_h_sigmoid_kernel(%arg0: i32, %arg1: memref<128x1024xf32, #tpu.memory_space<vmem>>, %arg2: memref<128x1024xf32, #tpu.memory_space<vmem>>) attributes {dimension_semantics = [#tpu.dimension_semantics<parallel>], iteration_bounds = array<i64: 2>, scalar_prefetch = 0 : i64, scratch_operands = 0 : i64, tpu.core_type = #tpu.core_type<tc>, window_params = [{transform_indices = @transform_0, window_bounds = array<i64: 128, 1024>}, {transform_indices = @transform_1, window_bounds = array<i64: 128, 1024>}]} {
    %c0 = arith.constant 0 : index
    %c0_0 = arith.constant 0 : index
    %0 = vector.load %arg1[%c0, %c0_0] : memref<128x1024xf32, #tpu.memory_space<vmem>>, vector<128x1024xf32>
    %cst = arith.constant 3.000000e+00 : f32
    %1 = vector.broadcast %cst : f32 to vector<128x1024xf32>
    %2 = arith.addf %0, %1 : vector<128x1024xf32>
    %cst_1 = arith.constant 0.000000e+00 : f32
    %cst_2 = arith.constant 6.000000e+00 : f32
    %3 = vector.broadcast %cst_1 : f32 to vector<128x1024xf32>
    %4 = arith.maximumf %3, %2 : vector<128x1024xf32>
    %5 = vector.broadcast %cst_2 : f32 to vector<128x1024xf32>
    %6 = arith.minimumf %5, %4 : vector<128x1024xf32>
    %cst_3 = arith.constant 0.166666672 : f32
    %7 = vector.broadcast %cst_3 : f32 to vector<128x1024xf32>
    %8 = arith.mulf %6, %7 : vector<128x1024xf32>
    %c0_4 = arith.constant 0 : index
    %c0_5 = arith.constant 0 : index
    %9 = vector.load %arg2[%c0_4, %c0_5] : memref<128x1024xf32, #tpu.memory_space<vmem>>, vector<128x1024xf32>
    tpu.vector_store %arg2[%c0_4, %c0_5], %8 {strides = array<i32>} : memref<128x1024xf32, #tpu.memory_space<vmem>>, vector<128x1024xf32>,
    return
  }
  func.func @transform_0(%arg0: i32) -> (i32, i32) {
    %c0_i32 = arith.constant 0 : i32
    %c0_i32_0 = arith.constant 0 : i32
    return %arg0, %c0_i32 : i32, i32
  }
  func.func @transform_1(%arg0: i32) -> (i32, i32) {
    %c0_i32 = arith.constant 0 : i32
    %c0_i32_0 = arith.constant 0 : i32
    return %arg0, %c0_i32 : i32, i32
  }
}

</mosaic_0001>

<bundles_post_ra>
// kernel: tpu_custom_call.1
= control target key start
LH: loop header
LB: loop body
LE: loop exit
PB: predicated region body
PF: predicated region fallthrough
CT: control target
= control target key end

     0   :  { %6 = vsyncpa [#allocation3], 0  ;;  %s1605_s0 = inlined_call_operand.hbm [shape: f32[256,1024], index: 0, kind: input, shape index: {}]   ;;  %s1606_s1 = inlined_call_operand.hbm [shape: f32[256,1024], index: 1, kind: output, shape index: {}]  }
   0x1   :  { %8 = vsyncpa [#allocation3 + $0x1], 0 }
   0x2   :  { %9 = vsyncpa [#allocation4], 0 }
   0x3   :  { %11 = vsyncpa [#allocation4 + $0x1], 0  ;;  %s1178_s6 = smov 0   ;;  %s1180_s7 = smov 0  }
   0x4   :  { %s1182_s8 = smov 0   ;;  %s1184_s9 = smov 0  }
   0x5 LB: > { %s1199_s10 = sadd.s32 4294967295, %s1160_s9   ;;  %s994_s11 = sadd.s32 4294967294, %s1160_s9   ;;  %s1160_s9 = sphi %s1184_s9, %s1619_s9   ;;  %s1156_s8 = sphi %s1182_s8, %s1618_s8   ;;  %s1152_s7 = sphi %s1180_s7, %s1617_s7   ;;  %s1148_s6 = sphi %s1178_s6, %s1616_s6  }
   0x6   : > { %s1203_s12 = sadd.s32 1, %s1160_s9   ;;  %s24_s13 = sadd.s32 1, %s1156_s8 }
   0x7   : > { %s21_s14 = ssub.s32 %s1160_s9, %s1203_s12  ;;  %p31_p0 = scmp.ne.s32.totalorder %s1156_s8, %s1152_s7 }
   0x8   : > { %p22_p1 = scmp.eq.s32.totalorder %s21_s14, 0  ;;  %p32_p2 = scmp.eq.s32.totalorder %s1160_s9, 0 }
   0x9   : > { %p37_p3 = scmp.ne.s32.totalorder %s1152_s7, %s1148_s6  ;;  %p38_p4 = scmp.eq.s32.totalorder %s1199_s10, 0 }
   0xa   : > { %s1215_s15 = scalar_select %p22_p1, %s1156_s8, %s24_s13  }
   0xb   : > { %p1217_p5 = por %p32_p2, %p31_p0  ;;  %p1221_p6 = por %p38_p4, %p37_p3 }
   0xc   : > { %p61_p7 = scmp.eq.s32.totalorder %s1199_s10, 1  ;;  %p67_p8 = scmp.eq.s32.totalorder %s994_s11, 1 }
   0xd   : > { %p1026_p10 = scmp.lt.s32.totalorder %s1160_s9, 2  ;;  %s87_s20 = sand.u32 1, %s1156_s8  }
   0xe   : > { %p1228_p11 = por %p61_p7, %p31_p0  ;;  %p1232_p12 = por %p67_p8, %p37_p3 }
   0xf   : > { %s1011_s21 = sshll.u32 %s1160_s9, 14  ;;  %s997_s22 = sshll.u32 %s87_s20, 10 }
  0x10   : > { %s1610_s18 = scalar_select %p1228_p11, 1, 0 }
  0x11   : > { %s1611_s19 = scalar_select %p1232_p12, 1, 0 }
  0x12   : > { %s1241_s25 = scalar_lea.hbm %s1605_s0, %s1011_s21  ;;  %s91_s26 = scalar_lea.vmem [#allocation2], %s997_s22 }
  0x13   : > { %s99_s27 = sshll.u32 %s91_s26, 4  ;;  %p1245_p13 = pnand %p1026_p10, %p1217_p5  ;;  %s1249_s27 = int_to_ptr.vmem [resolvable:$true] %s99_s27 }
  0x14   : > { %s1251_s29 = scalar_lea.sflag [#allocation3], %s87_s20  ;;  %s1064_s30 = scalar_lea.hbm %s1241_s25, 16384 }
  0x15   : > { %p1065_p0 = scmp.ne.s32.totalorder %s1241_s25, %s1064_s30  ;;  %p1066_p1 = pneg %p1245_p13 }
  0x16   : > { %s1069_s4 = scalar_lea.hbm %s1605_s0, 32768  ;;  %p1070_p4 = scmp.lt.u32.totalorder %s1241_s25, %s1605_s0 }
  0x17   : > { %p1067_p2 = pnand %p1066_p1, %p1065_p0  ;;  %p1071_p5 = scmp.lt.u32.totalorder %s1069_s4, %s1064_s30 }
  0x18   : > { %p1073_p8 = scmp.lt.u32.totalorder %s1064_s30, %s1241_s25 }
  0x19   : > { %p1068_p3 = pneg %p1067_p2  ;;  %p1072_p7 = por %p1071_p5, %p1070_p4 }
  0x1b   : > { %p1074_p10 = por %p1073_p8, %p1072_p7 }
  0x1d   : > { %p1075_p9 = pnand %p1074_p10, %p1068_p3 }
  0x1f   : > { %1078 = shalt.err (!%p1075_p9)
}
  0x20   : > { %s1079_s13 = scalar_lea.vmem %s1249_s27, 16384  ;;  %s1162_s14 = smov [#allocation2]  }
  0x21   : > { %p1080_p0 = scmp.ne.s32.totalorder %s1249_s27, %s1079_s13  ;;  %s1084_s16 = sshll.u32 %s1162_s14, 4  ;;  %s1085_s16 = int_to_ptr.vmem [resolvable:$false] %s1084_s16 }
  0x22   : > { %s1086_s20 = scalar_lea.vmem %s1085_s16, 32768  ;;  %p1087_p11 = scmp.lt.s32.totalorder %s1249_s27, %s1085_s16 }
  0x23   : > { %p1082_p2 = pnand %p1080_p0, %p1066_p1  ;;  %p1088_p4 = scmp.lt.s32.totalorder %s1086_s20, %s1079_s13 }
  0x25   : > { %p1083_p12 = pneg %p1082_p2  ;;  %p1089_p5 = por %p1088_p4, %p1087_p11 }
  0x27   : > { %p1090_p7 = pnand %p1089_p5, %p1083_p12 }
  0x29   : > { %1093 = shalt.err (!%p1090_p7)
}
  0x2a   : > { %s1163_s21 = smov 1024   ;;  %s1164_s22 = smov 64  }
  0x2b   : > { %1021 = dma.hbm_to_vmem [thread:$0]  (!%p1245_p13), %s1241_s25, 16384, %s1249_s27, %s1251_s29, %s1163_s21, %s1163_s21, %s1164_s22  }
  0x2c   : > { %p1001_p9 = scmp.ge.s32.totalorder %s1160_s9, 1  ;;  %p107_p1 = scmp.lt.s32.totalorder %s1160_s9, 3 }
  0x2e   : > { %p108_p3 = pnand %p1001_p9, %p107_p1 }
  0x2f   : > { %s1282_s23 = sand.u32 (!%p108_p3), 1, %s1152_s7  }
  0x30   : > { %111 = sbr.rel (%p108_p3) target bundleno = 229 (0xe5), region = 24  ;;  %s1002_s24 = sshll.u32 (!%p108_p3), %s1282_s23, 10 }
  0x31   : > { %s114_s26 = scalar_lea.sflag (!%p108_p3), [#allocation3], %s1282_s23  ;;  %s1288_s30 = scalar_lea.vmem (!%p108_p3), [#allocation2], %s1002_s24 }
  0x37   : > { %1139 = dma.done.wait (%p1221_p6), %s114_s26, 16384  }
  0x38   : > { %1141 = vsyncadd (%p1221_p6), %s114_s26, 4294950912  ;;  %v138_v0 = vld [vmem:[%s1288_s30] sm:$0xff]  ;;  %v139_v1 = vld [vmem:[%s1288_s30 + $0x8] sm:$0xff]  ;;  %s1310_s17 = scalar_lea.vmem [#allocation5], %s1002_s24  ;;  %s1013_s25 = sshll.u32 %s1199_s10, 14 }
  0x39   : > { %v140_v2 = vld [vmem:[%s1288_s30 + $0x10] sm:$0xff]  ;;  %v266_v3 = vadd.f32 3.0, %v138_v0  ;;  %v267_v4 = vadd.f32 3.0, %v139_v1  ;;  %v141_v6 = vld [vmem:[%s1288_s30 + $0x18] sm:$0xff]  ;;  %v142_v7 = vld [vmem:[%s1288_s30 + $0x20] sm:$0xff]  ;;  %s921_s27 = sshll.u32 %s1310_s17, 4  ;;  %s1557_s29 = scalar_lea.hbm %s1606_s1, %s1013_s25  ;;  %s1559_s27 = int_to_ptr.vmem [resolvable:$true] %s921_s27 }
  0x3a   : > { %v268_v5 = vadd.f32 3.0, %v140_v2  ;;  %v143_v8 = vld [vmem:[%s1288_s30 + $0x28] sm:$0xff]  ;;  %v269_v9 = vadd.f32 3.0, %v141_v6  ;;  %v270_v10 = vadd.f32 3.0, %v142_v7  ;;  %v144_v12 = vld [vmem:[%s1288_s30 + $0x30] sm:$0xff]  ;;  %v145_v13 = vld [vmem:[%s1288_s30 + $0x38] sm:$0xff] }
  0x3b   : > { %v271_v11 = vadd.f32 3.0, %v143_v8  ;;  %v394_v14 = vmax.f32 %v266_v3, 0.0  ;;  %v395_v15 = vmax.f32 %v267_v4, 0.0  ;;  %v272_v17 = vadd.f32 3.0, %v144_v12  ;;  %v146_v22 = vld [vmem:[%s1288_s30 + $0x40] sm:$0xff]  ;;  %v147_v23 = vld [vmem:[%s1288_s30 + $0x48] sm:$0xff] }
  0x3c   : > { %v396_v16 = vmax.f32 %v268_v5, 0.0  ;;  %v397_v18 = vmax.f32 %v269_v9, 0.0  ;;  %v398_v19 = vmax.f32 %v270_v10, 0.0  ;;  %v273_v21 = vadd.f32 3.0, %v145_v13  ;;  %v148_v28 = vld [vmem:[%s1288_s30 + $0x50] sm:$0xff]  ;;  %v149_v29 = vld [vmem:[%s1288_s30 + $0x58] sm:$0xff] }
  0x3d   : > { %v399_v20 = vmax.f32 %v271_v11, 0.0  ;;  %v522_v24 = vmin.f32 %v394_v14, 6.0  ;;  %v523_v25 = vmin.f32 %v395_v15, 6.0  ;;  %v400_v27 = vmax.f32 %v272_v17, 0.0  ;;  %v150_v34 = vld [vmem:[%s1288_s30 + $0x60] sm:$0xff]  ;;  %v151_v35 = vld [vmem:[%s1288_s30 + $0x68] sm:$0xff] }
  0x3e   : > { %v524_v26 = vmin.f32 %v396_v16, 6.0  ;;  %v525_v30 = vmin.f32 %v397_v18, 6.0  ;;  %v526_v31 = vmin.f32 %v398_v19, 6.0  ;;  %v401_v33 = vmax.f32 %v273_v21, 0.0  ;;  %v152_v50 = vld [vmem:[%s1288_s30 + $0x70] sm:$0xff]  ;;  %v153_v51 = vld [vmem:[%s1288_s30 + $0x78] sm:$0xff] }
  0x3f   : > { %v527_v32 = vmin.f32 %v399_v20, 6.0  ;;  %v650_v36 = vmul.f32 0.16666667, %v522_v24  ;;  %v651_v37 = vmul.f32 0.16666667, %v523_v25  ;;  %v528_v42 = vmin.f32 %v400_v27, 6.0 }
  0x40   : > { %v652_v38 = vmul.f32 0.16666667, %v524_v26  ;;  %v653_v39 = vmul.f32 0.16666667, %v525_v30  ;;  %v654_v40 = vmul.f32 0.16666667, %v526_v31 }
  0x41   : > { %v655_v41 = vmul.f32 0.16666667, %v527_v32  ;;  %778 = vst [vmem:[%s1310_s17] sm:$0xff] %v650_v36  ;;  %779 = vst [vmem:[%s1310_s17 + $0x8] sm:$0xff] %v651_v37  ;;  %v529_v43 = vmin.f32 %v401_v33, 6.0  ;;  %v274_v44 = vadd.f32 3.0, %v146_v22  ;;  %v275_v45 = vadd.f32 3.0, %v147_v23 }
  0x42   : > { %780 = vst [vmem:[%s1310_s17 + $0x10] sm:$0xff] %v652_v38  ;;  %781 = vst [vmem:[%s1310_s17 + $0x18] sm:$0xff] %v653_v39  ;;  %v276_v46 = vadd.f32 3.0, %v148_v28  ;;  %v277_v47 = vadd.f32 3.0, %v149_v29  ;;  %v278_v48 = vadd.f32 3.0, %v150_v34  ;;  %v279_v49 = vadd.f32 3.0, %v151_v35 }
  0x43   : > { %782 = vst [vmem:[%s1310_s17 + $0x20] sm:$0xff] %v654_v40  ;;  %783 = vst [vmem:[%s1310_s17 + $0x28] sm:$0xff] %v655_v41  ;;  %v656_v52 = vmul.f32 0.16666667, %v528_v42  ;;  %v657_v53 = vmul.f32 0.16666667, %v529_v43 }
  0x44   : > { %v402_v54 = vmax.f32 %v274_v44, 0.0  ;;  %v403_v55 = vmax.f32 %v275_v45, 0.0  ;;  %v404_v56 = vmax.f32 %v276_v46, 0.0  ;;  %v405_v57 = vmax.f32 %v277_v47, 0.0  ;;  %v154_v60 = vld [vmem:[%s1288_s30 + $0x80] sm:$0xff]  ;;  %v155_v1 = vld [vmem:[%s1288_s30 + $0x88] sm:$0xff] }
  0x45   : > { %v406_v58 = vmax.f32 %v278_v48, 0.0  ;;  %v407_v59 = vmax.f32 %v279_v49, 0.0  ;;  %784 = vst [vmem:[%s1310_s17 + $0x30] sm:$0xff] %v656_v52  ;;  %785 = vst [vmem:[%s1310_s17 + $0x38] sm:$0xff] %v657_v53  ;;  %v280_v63 = vadd.f32 3.0, %v152_v50  ;;  %v281_v0 = vadd.f32 3.0, %v153_v51 }
  0x46   : > { %v530_v61 = vmin.f32 %v402_v54, 6.0  ;;  %v531_v62 = vmin.f32 %v403_v55, 6.0  ;;  %v156_v2 = vld [vmem:[%s1288_s30 + $0x90] sm:$0xff]  ;;  %v157_v3 = vld [vmem:[%s1288_s30 + $0x98] sm:$0xff]  ;;  %v532_v4 = vmin.f32 %v404_v56, 6.0  ;;  %v533_v5 = vmin.f32 %v405_v57, 6.0 }
  0x47   : > { %v534_v6 = vmin.f32 %v406_v58, 6.0  ;;  %v535_v7 = vmin.f32 %v407_v59, 6.0  ;;  %v158_v8 = vld [vmem:[%s1288_s30 + $0xa0] sm:$0xff]  ;;  %v159_v9 = vld [vmem:[%s1288_s30 + $0xa8] sm:$0xff]  ;;  %v408_v12 = vmax.f32 %v280_v63, 0.0  ;;  %v409_v13 = vmax.f32 %v281_v0, 0.0 }
  0x48   : > { %v658_v10 = vmul.f32 0.16666667, %v530_v61  ;;  %v659_v11 = vmul.f32 0.16666667, %v531_v62  ;;  %v660_v14 = vmul.f32 0.16666667, %v532_v4 }
  0x49   : > { %v661_v15 = vmul.f32 0.16666667, %v533_v5  ;;  %v662_v16 = vmul.f32 0.16666667, %v534_v6  ;;  %v663_v17 = vmul.f32 0.16666667, %v535_v7 }
  0x4a   : > { %786 = vst [vmem:[%s1310_s17 + $0x40] sm:$0xff] %v658_v10  ;;  %787 = vst [vmem:[%s1310_s17 + $0x48] sm:$0xff] %v659_v11  ;;  %v536_v18 = vmin.f32 %v408_v12, 6.0  ;;  %v537_v19 = vmin.f32 %v409_v13, 6.0  ;;  %v282_v20 = vadd.f32 3.0, %v154_v60  ;;  %v283_v21 = vadd.f32 3.0, %v155_v1 }
  0x4b   : > { %788 = vst [vmem:[%s1310_s17 + $0x50] sm:$0xff] %v660_v14  ;;  %789 = vst [vmem:[%s1310_s17 + $0x58] sm:$0xff] %v661_v15  ;;  %v284_v22 = vadd.f32 3.0, %v156_v2  ;;  %v285_v23 = vadd.f32 3.0, %v157_v3  ;;  %v286_v24 = vadd.f32 3.0, %v158_v8  ;;  %v160_v25 = vld [vmem:[%s1288_s30 + $0xb0] sm:$0xff] }
  0x4c   : > { %790 = vst [vmem:[%s1310_s17 + $0x60] sm:$0xff] %v662_v16  ;;  %v161_v26 = vld [vmem:[%s1288_s30 + $0xb8] sm:$0xff]  ;;  %791 = vst [vmem:[%s1310_s17 + $0x68] sm:$0xff] %v663_v17  ;;  %v664_v27 = vmul.f32 0.16666667, %v536_v18  ;;  %v410_v29 = vmax.f32 %v282_v20, 0.0 }
  0x4d   : > { %v665_v28 = vmul.f32 0.16666667, %v537_v19  ;;  %v287_v30 = vadd.f32 3.0, %v159_v9  ;;  %v411_v31 = vmax.f32 %v283_v21, 0.0  ;;  %v412_v32 = vmax.f32 %v284_v22, 0.0  ;;  %v162_v39 = vld [vmem:[%s1288_s30 + $0xc0] sm:$0xff] }
  0x4e   : > { %v413_v33 = vmax.f32 %v285_v23, 0.0  ;;  %v414_v34 = vmax.f32 %v286_v24, 0.0  ;;  %792 = vst [vmem:[%s1310_s17 + $0x70] sm:$0xff] %v664_v27  ;;  %v538_v35 = vmin.f32 %v410_v29, 6.0  ;;  %v288_v37 = vadd.f32 3.0, %v160_v25  ;;  %v163_v40 = vld [vmem:[%s1288_s30 + $0xc8] sm:$0xff] }
  0x4f   : > { %793 = vst [vmem:[%s1310_s17 + $0x78] sm:$0xff] %v665_v28  ;;  %v415_v36 = vmax.f32 %v287_v30, 0.0  ;;  %v289_v38 = vadd.f32 3.0, %v161_v26  ;;  %v164_v41 = vld [vmem:[%s1288_s30 + $0xd0] sm:$0xff]  ;;  %v539_v42 = vmin.f32 %v411_v31, 6.0  ;;  %v540_v43 = vmin.f32 %v412_v32, 6.0 }
  0x50   : > { %v541_v44 = vmin.f32 %v413_v33, 6.0  ;;  %v542_v45 = vmin.f32 %v414_v34, 6.0  ;;  %v165_v46 = vld [vmem:[%s1288_s30 + $0xd8] sm:$0xff]  ;;  %v166_v47 = vld [vmem:[%s1288_s30 + $0xe0] sm:$0xff]  ;;  %v666_v48 = vmul.f32 0.16666667, %v538_v35 }
  0x51   : > { %v543_v49 = vmin.f32 %v415_v36, 6.0  ;;  %v416_v50 = vmax.f32 %v288_v37, 0.0  ;;  %v417_v51 = vmax.f32 %v289_v38, 0.0  ;;  %v167_v52 = vld [vmem:[%s1288_s30 + $0xe8] sm:$0xff]  ;;  %v667_v53 = vmul.f32 0.16666667, %v539_v42 }
  0x52   : > { %v668_v54 = vmul.f32 0.16666667, %v540_v43  ;;  %v669_v55 = vmul.f32 0.16666667, %v541_v44  ;;  %794 = vst [vmem:[%s1310_s17 + $0x80] sm:$0xff] %v666_v48  ;;  %v290_v60 = vadd.f32 3.0, %v162_v39 }
  0x53   : > { %v670_v56 = vmul.f32 0.16666667, %v542_v45  ;;  %v671_v57 = vmul.f32 0.16666667, %v543_v49  ;;  %v544_v58 = vmin.f32 %v416_v50, 6.0  ;;  %v545_v59 = vmin.f32 %v417_v51, 6.0 }
  0x54   : > { %795 = vst [vmem:[%s1310_s17 + $0x88] sm:$0xff] %v667_v53  ;;  %796 = vst [vmem:[%s1310_s17 + $0x90] sm:$0xff] %v668_v54  ;;  %v291_v61 = vadd.f32 3.0, %v163_v40  ;;  %v292_v62 = vadd.f32 3.0, %v164_v41  ;;  %v293_v63 = vadd.f32 3.0, %v165_v46  ;;  %v168_v0 = vld [vmem:[%s1288_s30 + $0xf0] sm:$0xff] }
  0x55   : > { %797 = vst [vmem:[%s1310_s17 + $0x98] sm:$0xff] %v669_v55  ;;  %v169_v1 = vld [vmem:[%s1288_s30 + $0xf8] sm:$0xff]  ;;  %798 = vst [vmem:[%s1310_s17 + $0xa0] sm:$0xff] %v670_v56  ;;  %v672_v2 = vmul.f32 0.16666667, %v544_v58  ;;  %v294_v4 = vadd.f32 3.0, %v166_v47 }
  0x56   : > { %799 = vst [vmem:[%s1310_s17 + $0xa8] sm:$0xff] %v671_v57  ;;  %v673_v3 = vmul.f32 0.16666667, %v545_v59  ;;  %v295_v5 = vadd.f32 3.0, %v167_v52  ;;  %v418_v6 = vmax.f32 %v290_v60, 0.0  ;;  %v419_v7 = vmax.f32 %v291_v61, 0.0 }
  0x57   : > { %v420_v8 = vmax.f32 %v292_v62, 0.0  ;;  %v421_v9 = vmax.f32 %v293_v63, 0.0  ;;  %800 = vst [vmem:[%s1310_s17 + $0xb0] sm:$0xff] %v672_v2  ;;  %v422_v10 = vmax.f32 %v294_v4, 0.0  ;;  %v296_v12 = vadd.f32 3.0, %v168_v0  ;;  %v170_v14 = vld [vmem:[%s1288_s30 + $0x100] sm:$0xff] }
  0x58   : > { %801 = vst [vmem:[%s1310_s17 + $0xb8] sm:$0xff] %v673_v3  ;;  %v423_v11 = vmax.f32 %v295_v5, 0.0  ;;  %v297_v13 = vadd.f32 3.0, %v169_v1  ;;  %v171_v15 = vld [vmem:[%s1288_s30 + $0x108] sm:$0xff]  ;;  %v546_v16 = vmin.f32 %v418_v6, 6.0  ;;  %v547_v17 = vmin.f32 %v419_v7, 6.0 }
  0x59   : > { %v548_v18 = vmin.f32 %v420_v8, 6.0  ;;  %v549_v19 = vmin.f32 %v421_v9, 6.0  ;;  %v172_v20 = vld [vmem:[%s1288_s30 + $0x110] sm:$0xff]  ;;  %v173_v21 = vld [vmem:[%s1288_s30 + $0x118] sm:$0xff]  ;;  %v550_v22 = vmin.f32 %v422_v10, 6.0  ;;  %v424_v24 = vmax.f32 %v296_v12, 0.0 }
  0x5a   : > { %v551_v23 = vmin.f32 %v423_v11, 6.0  ;;  %v425_v25 = vmax.f32 %v297_v13, 0.0  ;;  %v174_v26 = vld [vmem:[%s1288_s30 + $0x120] sm:$0xff]  ;;  %v175_v27 = vld [vmem:[%s1288_s30 + $0x128] sm:$0xff]  ;;  %v674_v28 = vmul.f32 0.16666667, %v546_v16 }
  0x5b   : > { %v675_v29 = vmul.f32 0.16666667, %v547_v17  ;;  %v676_v30 = vmul.f32 0.16666667, %v548_v18  ;;  %v677_v31 = vmul.f32 0.16666667, %v549_v19 }
  0x5c   : > { %v678_v32 = vmul.f32 0.16666667, %v550_v22  ;;  %v679_v33 = vmul.f32 0.16666667, %v551_v23  ;;  %802 = vst [vmem:[%s1310_s17 + $0xc0] sm:$0xff] %v674_v28  ;;  %v552_v34 = vmin.f32 %v424_v24, 6.0 }
  0x5d   : > { %803 = vst [vmem:[%s1310_s17 + $0xc8] sm:$0xff] %v675_v29  ;;  %804 = vst [vmem:[%s1310_s17 + $0xd0] sm:$0xff] %v676_v30  ;;  %v553_v35 = vmin.f32 %v425_v25, 6.0  ;;  %v298_v36 = vadd.f32 3.0, %v170_v14  ;;  %v299_v37 = vadd.f32 3.0, %v171_v15  ;;  %v300_v38 = vadd.f32 3.0, %v172_v20 }
  0x5e   : > { %805 = vst [vmem:[%s1310_s17 + $0xd8] sm:$0xff] %v677_v31  ;;  %806 = vst [vmem:[%s1310_s17 + $0xe0] sm:$0xff] %v678_v32  ;;  %v301_v39 = vadd.f32 3.0, %v173_v21  ;;  %v302_v40 = vadd.f32 3.0, %v174_v26  ;;  %v303_v41 = vadd.f32 3.0, %v175_v27  ;;  %v176_v42 = vld [vmem:[%s1288_s30 + $0x130] sm:$0xff] }
  0x5f   : > { %807 = vst [vmem:[%s1310_s17 + $0xe8] sm:$0xff] %v679_v33  ;;  %v177_v43 = vld [vmem:[%s1288_s30 + $0x138] sm:$0xff]  ;;  %v680_v44 = vmul.f32 0.16666667, %v552_v34  ;;  %v681_v45 = vmul.f32 0.16666667, %v553_v35 }
  0x60   : > { %v426_v46 = vmax.f32 %v298_v36, 0.0  ;;  %v427_v47 = vmax.f32 %v299_v37, 0.0  ;;  %v428_v48 = vmax.f32 %v300_v38, 0.0  ;;  %v429_v49 = vmax.f32 %v301_v39, 0.0  ;;  %v178_v52 = vld [vmem:[%s1288_s30 + $0x140] sm:$0xff]  ;;  %v179_v57 = vld [vmem:[%s1288_s30 + $0x148] sm:$0xff] }
  0x61   : > { %v430_v50 = vmax.f32 %v302_v40, 0.0  ;;  %v431_v51 = vmax.f32 %v303_v41, 0.0  ;;  %808 = vst [vmem:[%s1310_s17 + $0xf0] sm:$0xff] %v680_v44  ;;  %809 = vst [vmem:[%s1310_s17 + $0xf8] sm:$0xff] %v681_v45  ;;  %v304_v55 = vadd.f32 3.0, %v176_v42  ;;  %v305_v56 = vadd.f32 3.0, %v177_v43 }
  0x62   : > { %v554_v53 = vmin.f32 %v426_v46, 6.0  ;;  %v555_v54 = vmin.f32 %v427_v47, 6.0  ;;  %v180_v58 = vld [vmem:[%s1288_s30 + $0x150] sm:$0xff]  ;;  %v181_v59 = vld [vmem:[%s1288_s30 + $0x158] sm:$0xff]  ;;  %v556_v60 = vmin.f32 %v428_v48, 6.0  ;;  %v557_v61 = vmin.f32 %v429_v49, 6.0 }
  0x63   : > { %v558_v62 = vmin.f32 %v430_v50, 6.0  ;;  %v559_v63 = vmin.f32 %v431_v51, 6.0  ;;  %v182_v0 = vld [vmem:[%s1288_s30 + $0x160] sm:$0xff]  ;;  %v183_v1 = vld [vmem:[%s1288_s30 + $0x168] sm:$0xff]  ;;  %v432_v4 = vmax.f32 %v304_v55, 0.0  ;;  %v433_v5 = vmax.f32 %v305_v56, 0.0 }
  0x64   : > { %v682_v2 = vmul.f32 0.16666667, %v554_v53  ;;  %v683_v3 = vmul.f32 0.16666667, %v555_v54  ;;  %v684_v6 = vmul.f32 0.16666667, %v556_v60 }
  0x65   : > { %v685_v7 = vmul.f32 0.16666667, %v557_v61  ;;  %v686_v8 = vmul.f32 0.16666667, %v558_v62  ;;  %v687_v9 = vmul.f32 0.16666667, %v559_v63 }
  0x66   : > { %810 = vst [vmem:[%s1310_s17 + $0x100] sm:$0xff] %v682_v2  ;;  %811 = vst [vmem:[%s1310_s17 + $0x108] sm:$0xff] %v683_v3  ;;  %v560_v10 = vmin.f32 %v432_v4, 6.0  ;;  %v561_v11 = vmin.f32 %v433_v5, 6.0  ;;  %v306_v12 = vadd.f32 3.0, %v178_v52  ;;  %v307_v13 = vadd.f32 3.0, %v179_v57 }
  0x67   : > { %812 = vst [vmem:[%s1310_s17 + $0x110] sm:$0xff] %v684_v6  ;;  %813 = vst [vmem:[%s1310_s17 + $0x118] sm:$0xff] %v685_v7  ;;  %v308_v14 = vadd.f32 3.0, %v180_v58  ;;  %v309_v15 = vadd.f32 3.0, %v181_v59  ;;  %v310_v16 = vadd.f32 3.0, %v182_v0  ;;  %v184_v17 = vld [vmem:[%s1288_s30 + $0x170] sm:$0xff] }
  0x68   : > { %814 = vst [vmem:[%s1310_s17 + $0x120] sm:$0xff] %v686_v8  ;;  %v185_v18 = vld [vmem:[%s1288_s30 + $0x178] sm:$0xff]  ;;  %815 = vst [vmem:[%s1310_s17 + $0x128] sm:$0xff] %v687_v9  ;;  %v688_v19 = vmul.f32 0.16666667, %v560_v10  ;;  %v434_v21 = vmax.f32 %v306_v12, 0.0 }
  0x69   : > { %v689_v20 = vmul.f32 0.16666667, %v561_v11  ;;  %v311_v22 = vadd.f32 3.0, %v183_v1  ;;  %v435_v23 = vmax.f32 %v307_v13, 0.0  ;;  %v436_v24 = vmax.f32 %v308_v14, 0.0  ;;  %v186_v31 = vld [vmem:[%s1288_s30 + $0x180] sm:$0xff] }
  0x6a   : > { %v437_v25 = vmax.f32 %v309_v15, 0.0  ;;  %v438_v26 = vmax.f32 %v310_v16, 0.0  ;;  %816 = vst [vmem:[%s1310_s17 + $0x130] sm:$0xff] %v688_v19  ;;  %v562_v27 = vmin.f32 %v434_v21, 6.0  ;;  %v312_v29 = vadd.f32 3.0, %v184_v17  ;;  %v187_v32 = vld [vmem:[%s1288_s30 + $0x188] sm:$0xff] }
  0x6b   : > { %817 = vst [vmem:[%s1310_s17 + $0x138] sm:$0xff] %v689_v20  ;;  %v439_v28 = vmax.f32 %v311_v22, 0.0  ;;  %v313_v30 = vadd.f32 3.0, %v185_v18  ;;  %v188_v33 = vld [vmem:[%s1288_s30 + $0x190] sm:$0xff]  ;;  %v563_v34 = vmin.f32 %v435_v23, 6.0  ;;  %v564_v35 = vmin.f32 %v436_v24, 6.0 }
  0x6c   : > { %v565_v36 = vmin.f32 %v437_v25, 6.0  ;;  %v566_v37 = vmin.f32 %v438_v26, 6.0  ;;  %v189_v38 = vld [vmem:[%s1288_s30 + $0x198] sm:$0xff]  ;;  %v190_v39 = vld [vmem:[%s1288_s30 + $0x1a0] sm:$0xff]  ;;  %v690_v40 = vmul.f32 0.16666667, %v562_v27 }
  0x6d   : > { %v567_v41 = vmin.f32 %v439_v28, 6.0  ;;  %v440_v42 = vmax.f32 %v312_v29, 0.0  ;;  %v441_v43 = vmax.f32 %v313_v30, 0.0  ;;  %v191_v44 = vld [vmem:[%s1288_s30 + $0x1a8] sm:$0xff]  ;;  %v691_v45 = vmul.f32 0.16666667, %v563_v34 }
  0x6e   : > { %v692_v46 = vmul.f32 0.16666667, %v564_v35  ;;  %v693_v47 = vmul.f32 0.16666667, %v565_v36  ;;  %818 = vst [vmem:[%s1310_s17 + $0x140] sm:$0xff] %v690_v40  ;;  %v314_v52 = vadd.f32 3.0, %v186_v31 }
  0x6f   : > { %v694_v48 = vmul.f32 0.16666667, %v566_v37  ;;  %v695_v49 = vmul.f32 0.16666667, %v567_v41  ;;  %v568_v50 = vmin.f32 %v440_v42, 6.0  ;;  %v569_v51 = vmin.f32 %v441_v43, 6.0 }
  0x70   : > { %819 = vst [vmem:[%s1310_s17 + $0x148] sm:$0xff] %v691_v45  ;;  %820 = vst [vmem:[%s1310_s17 + $0x150] sm:$0xff] %v692_v46  ;;  %v315_v53 = vadd.f32 3.0, %v187_v32  ;;  %v316_v54 = vadd.f32 3.0, %v188_v33  ;;  %v317_v55 = vadd.f32 3.0, %v189_v38  ;;  %v192_v56 = vld [vmem:[%s1288_s30 + $0x1b0] sm:$0xff] }
  0x71   : > { %821 = vst [vmem:[%s1310_s17 + $0x158] sm:$0xff] %v693_v47  ;;  %v193_v57 = vld [vmem:[%s1288_s30 + $0x1b8] sm:$0xff]  ;;  %822 = vst [vmem:[%s1310_s17 + $0x160] sm:$0xff] %v694_v48  ;;  %v696_v58 = vmul.f32 0.16666667, %v568_v50  ;;  %v318_v60 = vadd.f32 3.0, %v190_v39 }
  0x72   : > { %823 = vst [vmem:[%s1310_s17 + $0x168] sm:$0xff] %v695_v49  ;;  %v697_v59 = vmul.f32 0.16666667, %v569_v51  ;;  %v319_v61 = vadd.f32 3.0, %v191_v44  ;;  %v442_v62 = vmax.f32 %v314_v52, 0.0  ;;  %v443_v63 = vmax.f32 %v315_v53, 0.0 }
  0x73   : > { %v444_v0 = vmax.f32 %v316_v54, 0.0  ;;  %v445_v1 = vmax.f32 %v317_v55, 0.0  ;;  %824 = vst [vmem:[%s1310_s17 + $0x170] sm:$0xff] %v696_v58  ;;  %v446_v2 = vmax.f32 %v318_v60, 0.0  ;;  %v320_v4 = vadd.f32 3.0, %v192_v56  ;;  %v194_v6 = vld [vmem:[%s1288_s30 + $0x1c0] sm:$0xff] }
  0x74   : > { %825 = vst [vmem:[%s1310_s17 + $0x178] sm:$0xff] %v697_v59  ;;  %v447_v3 = vmax.f32 %v319_v61, 0.0  ;;  %v321_v5 = vadd.f32 3.0, %v193_v57  ;;  %v195_v7 = vld [vmem:[%s1288_s30 + $0x1c8] sm:$0xff]  ;;  %v570_v8 = vmin.f32 %v442_v62, 6.0  ;;  %v571_v9 = vmin.f32 %v443_v63, 6.0 }
  0x75   : > { %v572_v10 = vmin.f32 %v444_v0, 6.0  ;;  %v573_v11 = vmin.f32 %v445_v1, 6.0  ;;  %v196_v12 = vld [vmem:[%s1288_s30 + $0x1d0] sm:$0xff]  ;;  %v197_v13 = vld [vmem:[%s1288_s30 + $0x1d8] sm:$0xff]  ;;  %v574_v14 = vmin.f32 %v446_v2, 6.0  ;;  %v448_v16 = vmax.f32 %v320_v4, 0.0 }
  0x76   : > { %v575_v15 = vmin.f32 %v447_v3, 6.0  ;;  %v449_v17 = vmax.f32 %v321_v5, 0.0  ;;  %v198_v18 = vld [vmem:[%s1288_s30 + $0x1e0] sm:$0xff]  ;;  %v199_v19 = vld [vmem:[%s1288_s30 + $0x1e8] sm:$0xff]  ;;  %v698_v20 = vmul.f32 0.16666667, %v570_v8 }
  0x77   : > { %v699_v21 = vmul.f32 0.16666667, %v571_v9  ;;  %v700_v22 = vmul.f32 0.16666667, %v572_v10  ;;  %v701_v23 = vmul.f32 0.16666667, %v573_v11 }
  0x78   : > { %v702_v24 = vmul.f32 0.16666667, %v574_v14  ;;  %v703_v25 = vmul.f32 0.16666667, %v575_v15  ;;  %826 = vst [vmem:[%s1310_s17 + $0x180] sm:$0xff] %v698_v20  ;;  %v576_v26 = vmin.f32 %v448_v16, 6.0 }
  0x79   : > { %827 = vst [vmem:[%s1310_s17 + $0x188] sm:$0xff] %v699_v21  ;;  %828 = vst [vmem:[%s1310_s17 + $0x190] sm:$0xff] %v700_v22  ;;  %v577_v27 = vmin.f32 %v449_v17, 6.0  ;;  %v322_v28 = vadd.f32 3.0, %v194_v6  ;;  %v323_v29 = vadd.f32 3.0, %v195_v7  ;;  %v324_v30 = vadd.f32 3.0, %v196_v12 }
  0x7a   : > { %829 = vst [vmem:[%s1310_s17 + $0x198] sm:$0xff] %v701_v23  ;;  %830 = vst [vmem:[%s1310_s17 + $0x1a0] sm:$0xff] %v702_v24  ;;  %v325_v31 = vadd.f32 3.0, %v197_v13  ;;  %v326_v32 = vadd.f32 3.0, %v198_v18  ;;  %v327_v33 = vadd.f32 3.0, %v199_v19  ;;  %v200_v34 = vld [vmem:[%s1288_s30 + $0x1f0] sm:$0xff] }
  0x7b   : > { %831 = vst [vmem:[%s1310_s17 + $0x1a8] sm:$0xff] %v703_v25  ;;  %v201_v35 = vld [vmem:[%s1288_s30 + $0x1f8] sm:$0xff]  ;;  %v704_v36 = vmul.f32 0.16666667, %v576_v26  ;;  %v705_v37 = vmul.f32 0.16666667, %v577_v27 }
  0x7c   : > { %v450_v38 = vmax.f32 %v322_v28, 0.0  ;;  %v451_v39 = vmax.f32 %v323_v29, 0.0  ;;  %v452_v40 = vmax.f32 %v324_v30, 0.0  ;;  %v453_v41 = vmax.f32 %v325_v31, 0.0  ;;  %v202_v44 = vld [vmem:[%s1288_s30 + $0x200] sm:$0xff]  ;;  %v203_v49 = vld [vmem:[%s1288_s30 + $0x208] sm:$0xff] }
  0x7d   : > { %v454_v42 = vmax.f32 %v326_v32, 0.0  ;;  %v455_v43 = vmax.f32 %v327_v33, 0.0  ;;  %832 = vst [vmem:[%s1310_s17 + $0x1b0] sm:$0xff] %v704_v36  ;;  %833 = vst [vmem:[%s1310_s17 + $0x1b8] sm:$0xff] %v705_v37  ;;  %v328_v47 = vadd.f32 3.0, %v200_v34  ;;  %v329_v48 = vadd.f32 3.0, %v201_v35 }
  0x7e   : > { %v578_v45 = vmin.f32 %v450_v38, 6.0  ;;  %v579_v46 = vmin.f32 %v451_v39, 6.0  ;;  %v204_v50 = vld [vmem:[%s1288_s30 + $0x210] sm:$0xff]  ;;  %v205_v51 = vld [vmem:[%s1288_s30 + $0x218] sm:$0xff]  ;;  %v580_v52 = vmin.f32 %v452_v40, 6.0  ;;  %v581_v53 = vmin.f32 %v453_v41, 6.0 }
  0x7f   : > { %v582_v54 = vmin.f32 %v454_v42, 6.0  ;;  %v583_v55 = vmin.f32 %v455_v43, 6.0  ;;  %v206_v56 = vld [vmem:[%s1288_s30 + $0x220] sm:$0xff]  ;;  %v207_v57 = vld [vmem:[%s1288_s30 + $0x228] sm:$0xff]  ;;  %v456_v60 = vmax.f32 %v328_v47, 0.0  ;;  %v457_v61 = vmax.f32 %v329_v48, 0.0 }
  0x80   : > { %v706_v58 = vmul.f32 0.16666667, %v578_v45  ;;  %v707_v59 = vmul.f32 0.16666667, %v579_v46  ;;  %v708_v62 = vmul.f32 0.16666667, %v580_v52 }
  0x81   : > { %v709_v63 = vmul.f32 0.16666667, %v581_v53  ;;  %v710_v0 = vmul.f32 0.16666667, %v582_v54  ;;  %v711_v1 = vmul.f32 0.16666667, %v583_v55 }
  0x82   : > { %834 = vst [vmem:[%s1310_s17 + $0x1c0] sm:$0xff] %v706_v58  ;;  %835 = vst [vmem:[%s1310_s17 + $0x1c8] sm:$0xff] %v707_v59  ;;  %v584_v2 = vmin.f32 %v456_v60, 6.0  ;;  %v585_v3 = vmin.f32 %v457_v61, 6.0  ;;  %v330_v4 = vadd.f32 3.0, %v202_v44  ;;  %v331_v5 = vadd.f32 3.0, %v203_v49 }
  0x83   : > { %836 = vst [vmem:[%s1310_s17 + $0x1d0] sm:$0xff] %v708_v62  ;;  %837 = vst [vmem:[%s1310_s17 + $0x1d8] sm:$0xff] %v709_v63  ;;  %v332_v6 = vadd.f32 3.0, %v204_v50  ;;  %v333_v7 = vadd.f32 3.0, %v205_v51  ;;  %v334_v8 = vadd.f32 3.0, %v206_v56  ;;  %v208_v9 = vld [vmem:[%s1288_s30 + $0x230] sm:$0xff] }
  0x84   : > { %838 = vst [vmem:[%s1310_s17 + $0x1e0] sm:$0xff] %v710_v0  ;;  %v209_v10 = vld [vmem:[%s1288_s30 + $0x238] sm:$0xff]  ;;  %839 = vst [vmem:[%s1310_s17 + $0x1e8] sm:$0xff] %v711_v1  ;;  %v712_v11 = vmul.f32 0.16666667, %v584_v2  ;;  %v458_v13 = vmax.f32 %v330_v4, 0.0 }
  0x85   : > { %v713_v12 = vmul.f32 0.16666667, %v585_v3  ;;  %v335_v14 = vadd.f32 3.0, %v207_v57  ;;  %v459_v15 = vmax.f32 %v331_v5, 0.0  ;;  %v460_v16 = vmax.f32 %v332_v6, 0.0  ;;  %v210_v23 = vld [vmem:[%s1288_s30 + $0x240] sm:$0xff] }
  0x86   : > { %v461_v17 = vmax.f32 %v333_v7, 0.0  ;;  %v462_v18 = vmax.f32 %v334_v8, 0.0  ;;  %840 = vst [vmem:[%s1310_s17 + $0x1f0] sm:$0xff] %v712_v11  ;;  %v586_v19 = vmin.f32 %v458_v13, 6.0  ;;  %v336_v21 = vadd.f32 3.0, %v208_v9  ;;  %v211_v24 = vld [vmem:[%s1288_s30 + $0x248] sm:$0xff] }
  0x87   : > { %841 = vst [vmem:[%s1310_s17 + $0x1f8] sm:$0xff] %v713_v12  ;;  %v463_v20 = vmax.f32 %v335_v14, 0.0  ;;  %v337_v22 = vadd.f32 3.0, %v209_v10  ;;  %v212_v25 = vld [vmem:[%s1288_s30 + $0x250] sm:$0xff]  ;;  %v587_v26 = vmin.f32 %v459_v15, 6.0  ;;  %v588_v27 = vmin.f32 %v460_v16, 6.0 }
  0x88   : > { %v589_v28 = vmin.f32 %v461_v17, 6.0  ;;  %v590_v29 = vmin.f32 %v462_v18, 6.0  ;;  %v213_v30 = vld [vmem:[%s1288_s30 + $0x258] sm:$0xff]  ;;  %v214_v31 = vld [vmem:[%s1288_s30 + $0x260] sm:$0xff]  ;;  %v714_v32 = vmul.f32 0.16666667, %v586_v19 }
  0x89   : > { %v591_v33 = vmin.f32 %v463_v20, 6.0  ;;  %v464_v34 = vmax.f32 %v336_v21, 0.0  ;;  %v465_v35 = vmax.f32 %v337_v22, 0.0  ;;  %v215_v36 = vld [vmem:[%s1288_s30 + $0x268] sm:$0xff]  ;;  %v715_v37 = vmul.f32 0.16666667, %v587_v26 }
  0x8a   : > { %v716_v38 = vmul.f32 0.16666667, %v588_v27  ;;  %v717_v39 = vmul.f32 0.16666667, %v589_v28  ;;  %842 = vst [vmem:[%s1310_s17 + $0x200] sm:$0xff] %v714_v32  ;;  %v338_v44 = vadd.f32 3.0, %v210_v23 }
  0x8b   : > { %v718_v40 = vmul.f32 0.16666667, %v590_v29  ;;  %v719_v41 = vmul.f32 0.16666667, %v591_v33  ;;  %v592_v42 = vmin.f32 %v464_v34, 6.0  ;;  %v593_v43 = vmin.f32 %v465_v35, 6.0 }
  0x8c   : > { %843 = vst [vmem:[%s1310_s17 + $0x208] sm:$0xff] %v715_v37  ;;  %844 = vst [vmem:[%s1310_s17 + $0x210] sm:$0xff] %v716_v38  ;;  %v339_v45 = vadd.f32 3.0, %v211_v24  ;;  %v340_v46 = vadd.f32 3.0, %v212_v25  ;;  %v341_v47 = vadd.f32 3.0, %v213_v30  ;;  %v216_v48 = vld [vmem:[%s1288_s30 + $0x270] sm:$0xff] }
  0x8d   : > { %845 = vst [vmem:[%s1310_s17 + $0x218] sm:$0xff] %v717_v39  ;;  %v217_v49 = vld [vmem:[%s1288_s30 + $0x278] sm:$0xff]  ;;  %846 = vst [vmem:[%s1310_s17 + $0x220] sm:$0xff] %v718_v40  ;;  %v720_v50 = vmul.f32 0.16666667, %v592_v42  ;;  %v342_v52 = vadd.f32 3.0, %v214_v31 }
  0x8e   : > { %847 = vst [vmem:[%s1310_s17 + $0x228] sm:$0xff] %v719_v41  ;;  %v721_v51 = vmul.f32 0.16666667, %v593_v43  ;;  %v343_v53 = vadd.f32 3.0, %v215_v36  ;;  %v466_v54 = vmax.f32 %v338_v44, 0.0  ;;  %v467_v55 = vmax.f32 %v339_v45, 0.0 }
  0x8f   : > { %v468_v56 = vmax.f32 %v340_v46, 0.0  ;;  %v469_v57 = vmax.f32 %v341_v47, 0.0  ;;  %848 = vst [vmem:[%s1310_s17 + $0x230] sm:$0xff] %v720_v50  ;;  %v470_v58 = vmax.f32 %v342_v52, 0.0  ;;  %v344_v60 = vadd.f32 3.0, %v216_v48  ;;  %v218_v62 = vld [vmem:[%s1288_s30 + $0x280] sm:$0xff] }
  0x90   : > { %849 = vst [vmem:[%s1310_s17 + $0x238] sm:$0xff] %v721_v51  ;;  %v471_v59 = vmax.f32 %v343_v53, 0.0  ;;  %v345_v61 = vadd.f32 3.0, %v217_v49  ;;  %v219_v63 = vld [vmem:[%s1288_s30 + $0x288] sm:$0xff]  ;;  %v594_v0 = vmin.f32 %v466_v54, 6.0  ;;  %v595_v1 = vmin.f32 %v467_v55, 6.0 }
  0x91   : > { %v596_v2 = vmin.f32 %v468_v56, 6.0  ;;  %v597_v3 = vmin.f32 %v469_v57, 6.0  ;;  %v220_v4 = vld [vmem:[%s1288_s30 + $0x290] sm:$0xff]  ;;  %v221_v5 = vld [vmem:[%s1288_s30 + $0x298] sm:$0xff]  ;;  %v598_v6 = vmin.f32 %v470_v58, 6.0  ;;  %v472_v8 = vmax.f32 %v344_v60, 0.0 }
  0x92   : > { %v599_v7 = vmin.f32 %v471_v59, 6.0  ;;  %v473_v9 = vmax.f32 %v345_v61, 0.0  ;;  %v222_v10 = vld [vmem:[%s1288_s30 + $0x2a0] sm:$0xff]  ;;  %v223_v11 = vld [vmem:[%s1288_s30 + $0x2a8] sm:$0xff]  ;;  %v722_v12 = vmul.f32 0.16666667, %v594_v0 }
  0x93   : > { %v723_v13 = vmul.f32 0.16666667, %v595_v1  ;;  %v724_v14 = vmul.f32 0.16666667, %v596_v2  ;;  %v725_v15 = vmul.f32 0.16666667, %v597_v3 }
  0x94   : > { %v726_v16 = vmul.f32 0.16666667, %v598_v6  ;;  %v727_v17 = vmul.f32 0.16666667, %v599_v7  ;;  %850 = vst [vmem:[%s1310_s17 + $0x240] sm:$0xff] %v722_v12  ;;  %v600_v18 = vmin.f32 %v472_v8, 6.0 }
  0x95   : > { %851 = vst [vmem:[%s1310_s17 + $0x248] sm:$0xff] %v723_v13  ;;  %852 = vst [vmem:[%s1310_s17 + $0x250] sm:$0xff] %v724_v14  ;;  %v601_v19 = vmin.f32 %v473_v9, 6.0  ;;  %v346_v20 = vadd.f32 3.0, %v218_v62  ;;  %v347_v21 = vadd.f32 3.0, %v219_v63  ;;  %v348_v22 = vadd.f32 3.0, %v220_v4 }
  0x96   : > { %853 = vst [vmem:[%s1310_s17 + $0x258] sm:$0xff] %v725_v15  ;;  %854 = vst [vmem:[%s1310_s17 + $0x260] sm:$0xff] %v726_v16  ;;  %v349_v23 = vadd.f32 3.0, %v221_v5  ;;  %v350_v24 = vadd.f32 3.0, %v222_v10  ;;  %v351_v25 = vadd.f32 3.0, %v223_v11  ;;  %v224_v26 = vld [vmem:[%s1288_s30 + $0x2b0] sm:$0xff] }
  0x97   : > { %855 = vst [vmem:[%s1310_s17 + $0x268] sm:$0xff] %v727_v17  ;;  %v225_v27 = vld [vmem:[%s1288_s30 + $0x2b8] sm:$0xff]  ;;  %v728_v28 = vmul.f32 0.16666667, %v600_v18  ;;  %v729_v29 = vmul.f32 0.16666667, %v601_v19 }
  0x98   : > { %v474_v30 = vmax.f32 %v346_v20, 0.0  ;;  %v475_v31 = vmax.f32 %v347_v21, 0.0  ;;  %v476_v32 = vmax.f32 %v348_v22, 0.0  ;;  %v477_v33 = vmax.f32 %v349_v23, 0.0  ;;  %v226_v36 = vld [vmem:[%s1288_s30 + $0x2c0] sm:$0xff]  ;;  %v227_v41 = vld [vmem:[%s1288_s30 + $0x2c8] sm:$0xff] }
  0x99   : > { %v478_v34 = vmax.f32 %v350_v24, 0.0  ;;  %v479_v35 = vmax.f32 %v351_v25, 0.0  ;;  %856 = vst [vmem:[%s1310_s17 + $0x270] sm:$0xff] %v728_v28  ;;  %857 = vst [vmem:[%s1310_s17 + $0x278] sm:$0xff] %v729_v29  ;;  %v352_v39 = vadd.f32 3.0, %v224_v26  ;;  %v353_v40 = vadd.f32 3.0, %v225_v27 }
  0x9a   : > { %v602_v37 = vmin.f32 %v474_v30, 6.0  ;;  %v603_v38 = vmin.f32 %v475_v31, 6.0  ;;  %v228_v42 = vld [vmem:[%s1288_s30 + $0x2d0] sm:$0xff]  ;;  %v229_v43 = vld [vmem:[%s1288_s30 + $0x2d8] sm:$0xff]  ;;  %v604_v44 = vmin.f32 %v476_v32, 6.0  ;;  %v605_v45 = vmin.f32 %v477_v33, 6.0 }
  0x9b   : > { %v606_v46 = vmin.f32 %v478_v34, 6.0  ;;  %v607_v47 = vmin.f32 %v479_v35, 6.0  ;;  %v230_v48 = vld [vmem:[%s1288_s30 + $0x2e0] sm:$0xff]  ;;  %v231_v49 = vld [vmem:[%s1288_s30 + $0x2e8] sm:$0xff]  ;;  %v480_v52 = vmax.f32 %v352_v39, 0.0  ;;  %v481_v53 = vmax.f32 %v353_v40, 0.0 }
  0x9c   : > { %v730_v50 = vmul.f32 0.16666667, %v602_v37  ;;  %v731_v51 = vmul.f32 0.16666667, %v603_v38  ;;  %v732_v54 = vmul.f32 0.16666667, %v604_v44 }
  0x9d   : > { %v733_v55 = vmul.f32 0.16666667, %v605_v45  ;;  %v734_v56 = vmul.f32 0.16666667, %v606_v46  ;;  %v735_v57 = vmul.f32 0.16666667, %v607_v47 }
  0x9e   : > { %858 = vst [vmem:[%s1310_s17 + $0x280] sm:$0xff] %v730_v50  ;;  %859 = vst [vmem:[%s1310_s17 + $0x288] sm:$0xff] %v731_v51  ;;  %v608_v58 = vmin.f32 %v480_v52, 6.0  ;;  %v609_v59 = vmin.f32 %v481_v53, 6.0  ;;  %v354_v60 = vadd.f32 3.0, %v226_v36  ;;  %v355_v61 = vadd.f32 3.0, %v227_v41 }
  0x9f   : > { %860 = vst [vmem:[%s1310_s17 + $0x290] sm:$0xff] %v732_v54  ;;  %861 = vst [vmem:[%s1310_s17 + $0x298] sm:$0xff] %v733_v55  ;;  %v356_v62 = vadd.f32 3.0, %v228_v42  ;;  %v357_v63 = vadd.f32 3.0, %v229_v43  ;;  %v358_v0 = vadd.f32 3.0, %v230_v48  ;;  %v232_v1 = vld [vmem:[%s1288_s30 + $0x2f0] sm:$0xff] }
  0xa0   : > { %862 = vst [vmem:[%s1310_s17 + $0x2a0] sm:$0xff] %v734_v56  ;;  %v233_v2 = vld [vmem:[%s1288_s30 + $0x2f8] sm:$0xff]  ;;  %863 = vst [vmem:[%s1310_s17 + $0x2a8] sm:$0xff] %v735_v57  ;;  %v736_v3 = vmul.f32 0.16666667, %v608_v58  ;;  %v482_v5 = vmax.f32 %v354_v60, 0.0 }
  0xa1   : > { %v737_v4 = vmul.f32 0.16666667, %v609_v59  ;;  %v359_v6 = vadd.f32 3.0, %v231_v49  ;;  %v483_v7 = vmax.f32 %v355_v61, 0.0  ;;  %v484_v8 = vmax.f32 %v356_v62, 0.0  ;;  %v234_v15 = vld [vmem:[%s1288_s30 + $0x300] sm:$0xff] }
  0xa2   : > { %v485_v9 = vmax.f32 %v357_v63, 0.0  ;;  %v486_v10 = vmax.f32 %v358_v0, 0.0  ;;  %864 = vst [vmem:[%s1310_s17 + $0x2b0] sm:$0xff] %v736_v3  ;;  %v610_v11 = vmin.f32 %v482_v5, 6.0  ;;  %v360_v13 = vadd.f32 3.0, %v232_v1  ;;  %v235_v16 = vld [vmem:[%s1288_s30 + $0x308] sm:$0xff] }
  0xa3   : > { %865 = vst [vmem:[%s1310_s17 + $0x2b8] sm:$0xff] %v737_v4  ;;  %v487_v12 = vmax.f32 %v359_v6, 0.0  ;;  %v361_v14 = vadd.f32 3.0, %v233_v2  ;;  %v236_v17 = vld [vmem:[%s1288_s30 + $0x310] sm:$0xff]  ;;  %v611_v18 = vmin.f32 %v483_v7, 6.0  ;;  %v612_v19 = vmin.f32 %v484_v8, 6.0 }
  0xa4   : > { %v613_v20 = vmin.f32 %v485_v9, 6.0  ;;  %v614_v21 = vmin.f32 %v486_v10, 6.0  ;;  %v237_v22 = vld [vmem:[%s1288_s30 + $0x318] sm:$0xff]  ;;  %v238_v23 = vld [vmem:[%s1288_s30 + $0x320] sm:$0xff]  ;;  %v738_v24 = vmul.f32 0.16666667, %v610_v11 }
  0xa5   : > { %v615_v25 = vmin.f32 %v487_v12, 6.0  ;;  %v488_v26 = vmax.f32 %v360_v13, 0.0  ;;  %v489_v27 = vmax.f32 %v361_v14, 0.0  ;;  %v239_v28 = vld [vmem:[%s1288_s30 + $0x328] sm:$0xff]  ;;  %v739_v29 = vmul.f32 0.16666667, %v611_v18 }
  0xa6   : > { %v740_v30 = vmul.f32 0.16666667, %v612_v19  ;;  %v741_v31 = vmul.f32 0.16666667, %v613_v20  ;;  %866 = vst [vmem:[%s1310_s17 + $0x2c0] sm:$0xff] %v738_v24  ;;  %v362_v36 = vadd.f32 3.0, %v234_v15 }
  0xa7   : > { %v742_v32 = vmul.f32 0.16666667, %v614_v21  ;;  %v743_v33 = vmul.f32 0.16666667, %v615_v25  ;;  %v616_v34 = vmin.f32 %v488_v26, 6.0  ;;  %v617_v35 = vmin.f32 %v489_v27, 6.0 }
  0xa8   : > { %867 = vst [vmem:[%s1310_s17 + $0x2c8] sm:$0xff] %v739_v29  ;;  %868 = vst [vmem:[%s1310_s17 + $0x2d0] sm:$0xff] %v740_v30  ;;  %v363_v37 = vadd.f32 3.0, %v235_v16  ;;  %v364_v38 = vadd.f32 3.0, %v236_v17  ;;  %v365_v39 = vadd.f32 3.0, %v237_v22  ;;  %v240_v40 = vld [vmem:[%s1288_s30 + $0x330] sm:$0xff] }
  0xa9   : > { %869 = vst [vmem:[%s1310_s17 + $0x2d8] sm:$0xff] %v741_v31  ;;  %v241_v41 = vld [vmem:[%s1288_s30 + $0x338] sm:$0xff]  ;;  %870 = vst [vmem:[%s1310_s17 + $0x2e0] sm:$0xff] %v742_v32  ;;  %v744_v42 = vmul.f32 0.16666667, %v616_v34  ;;  %v366_v44 = vadd.f32 3.0, %v238_v23 }
  0xaa   : > { %871 = vst [vmem:[%s1310_s17 + $0x2e8] sm:$0xff] %v743_v33  ;;  %v745_v43 = vmul.f32 0.16666667, %v617_v35  ;;  %v367_v45 = vadd.f32 3.0, %v239_v28  ;;  %v490_v46 = vmax.f32 %v362_v36, 0.0  ;;  %v491_v47 = vmax.f32 %v363_v37, 0.0 }
  0xab   : > { %v492_v48 = vmax.f32 %v364_v38, 0.0  ;;  %v493_v49 = vmax.f32 %v365_v39, 0.0  ;;  %872 = vst [vmem:[%s1310_s17 + $0x2f0] sm:$0xff] %v744_v42  ;;  %v494_v50 = vmax.f32 %v366_v44, 0.0  ;;  %v368_v52 = vadd.f32 3.0, %v240_v40  ;;  %v242_v54 = vld [vmem:[%s1288_s30 + $0x340] sm:$0xff] }
  0xac   : > { %873 = vst [vmem:[%s1310_s17 + $0x2f8] sm:$0xff] %v745_v43  ;;  %v495_v51 = vmax.f32 %v367_v45, 0.0  ;;  %v369_v53 = vadd.f32 3.0, %v241_v41  ;;  %v243_v55 = vld [vmem:[%s1288_s30 + $0x348] sm:$0xff]  ;;  %v618_v56 = vmin.f32 %v490_v46, 6.0  ;;  %v619_v57 = vmin.f32 %v491_v47, 6.0 }
  0xad   : > { %v620_v58 = vmin.f32 %v492_v48, 6.0  ;;  %v621_v59 = vmin.f32 %v493_v49, 6.0  ;;  %v244_v60 = vld [vmem:[%s1288_s30 + $0x350] sm:$0xff]  ;;  %v245_v61 = vld [vmem:[%s1288_s30 + $0x358] sm:$0xff]  ;;  %v622_v62 = vmin.f32 %v494_v50, 6.0  ;;  %v496_v0 = vmax.f32 %v368_v52, 0.0 }
  0xae   : > { %v623_v63 = vmin.f32 %v495_v51, 6.0  ;;  %v497_v1 = vmax.f32 %v369_v53, 0.0  ;;  %v246_v2 = vld [vmem:[%s1288_s30 + $0x360] sm:$0xff]  ;;  %v247_v3 = vld [vmem:[%s1288_s30 + $0x368] sm:$0xff]  ;;  %v746_v4 = vmul.f32 0.16666667, %v618_v56 }
  0xaf   : > { %v747_v5 = vmul.f32 0.16666667, %v619_v57  ;;  %v748_v6 = vmul.f32 0.16666667, %v620_v58  ;;  %v749_v7 = vmul.f32 0.16666667, %v621_v59 }
  0xb0   : > { %v750_v8 = vmul.f32 0.16666667, %v622_v62  ;;  %v751_v9 = vmul.f32 0.16666667, %v623_v63  ;;  %874 = vst [vmem:[%s1310_s17 + $0x300] sm:$0xff] %v746_v4  ;;  %v624_v10 = vmin.f32 %v496_v0, 6.0 }
  0xb1   : > { %875 = vst [vmem:[%s1310_s17 + $0x308] sm:$0xff] %v747_v5  ;;  %876 = vst [vmem:[%s1310_s17 + $0x310] sm:$0xff] %v748_v6  ;;  %v625_v11 = vmin.f32 %v497_v1, 6.0  ;;  %v370_v12 = vadd.f32 3.0, %v242_v54  ;;  %v371_v13 = vadd.f32 3.0, %v243_v55  ;;  %v372_v14 = vadd.f32 3.0, %v244_v60 }
  0xb2   : > { %877 = vst [vmem:[%s1310_s17 + $0x318] sm:$0xff] %v749_v7  ;;  %878 = vst [vmem:[%s1310_s17 + $0x320] sm:$0xff] %v750_v8  ;;  %v373_v15 = vadd.f32 3.0, %v245_v61  ;;  %v374_v16 = vadd.f32 3.0, %v246_v2  ;;  %v375_v17 = vadd.f32 3.0, %v247_v3  ;;  %v248_v18 = vld [vmem:[%s1288_s30 + $0x370] sm:$0xff] }
  0xb3   : > { %879 = vst [vmem:[%s1310_s17 + $0x328] sm:$0xff] %v751_v9  ;;  %v249_v19 = vld [vmem:[%s1288_s30 + $0x378] sm:$0xff]  ;;  %v752_v20 = vmul.f32 0.16666667, %v624_v10  ;;  %v753_v21 = vmul.f32 0.16666667, %v625_v11 }
  0xb4   : > { %v498_v22 = vmax.f32 %v370_v12, 0.0  ;;  %v499_v23 = vmax.f32 %v371_v13, 0.0  ;;  %v500_v24 = vmax.f32 %v372_v14, 0.0  ;;  %v501_v25 = vmax.f32 %v373_v15, 0.0  ;;  %v250_v28 = vld [vmem:[%s1288_s30 + $0x380] sm:$0xff]  ;;  %v251_v33 = vld [vmem:[%s1288_s30 + $0x388] sm:$0xff] }
  0xb5   : > { %v502_v26 = vmax.f32 %v374_v16, 0.0  ;;  %v503_v27 = vmax.f32 %v375_v17, 0.0  ;;  %880 = vst [vmem:[%s1310_s17 + $0x330] sm:$0xff] %v752_v20  ;;  %881 = vst [vmem:[%s1310_s17 + $0x338] sm:$0xff] %v753_v21  ;;  %v376_v31 = vadd.f32 3.0, %v248_v18  ;;  %v377_v32 = vadd.f32 3.0, %v249_v19 }
  0xb6   : > { %v626_v29 = vmin.f32 %v498_v22, 6.0  ;;  %v627_v30 = vmin.f32 %v499_v23, 6.0  ;;  %v252_v34 = vld [vmem:[%s1288_s30 + $0x390] sm:$0xff]  ;;  %v253_v35 = vld [vmem:[%s1288_s30 + $0x398] sm:$0xff]  ;;  %v628_v36 = vmin.f32 %v500_v24, 6.0  ;;  %v629_v37 = vmin.f32 %v501_v25, 6.0 }
  0xb7   : > { %v630_v38 = vmin.f32 %v502_v26, 6.0  ;;  %v631_v39 = vmin.f32 %v503_v27, 6.0  ;;  %v254_v40 = vld [vmem:[%s1288_s30 + $0x3a0] sm:$0xff]  ;;  %v255_v41 = vld [vmem:[%s1288_s30 + $0x3a8] sm:$0xff]  ;;  %v504_v44 = vmax.f32 %v376_v31, 0.0  ;;  %v505_v45 = vmax.f32 %v377_v32, 0.0 }
  0xb8   : > { %v754_v42 = vmul.f32 0.16666667, %v626_v29  ;;  %v755_v43 = vmul.f32 0.16666667, %v627_v30  ;;  %v756_v46 = vmul.f32 0.16666667, %v628_v36 }
  0xb9   : > { %v757_v47 = vmul.f32 0.16666667, %v629_v37  ;;  %v758_v48 = vmul.f32 0.16666667, %v630_v38  ;;  %v759_v49 = vmul.f32 0.16666667, %v631_v39 }
  0xba   : > { %882 = vst [vmem:[%s1310_s17 + $0x340] sm:$0xff] %v754_v42  ;;  %883 = vst [vmem:[%s1310_s17 + $0x348] sm:$0xff] %v755_v43  ;;  %v632_v50 = vmin.f32 %v504_v44, 6.0  ;;  %v633_v51 = vmin.f32 %v505_v45, 6.0  ;;  %v378_v52 = vadd.f32 3.0, %v250_v28  ;;  %v379_v53 = vadd.f32 3.0, %v251_v33 }
  0xbb   : > { %884 = vst [vmem:[%s1310_s17 + $0x350] sm:$0xff] %v756_v46  ;;  %885 = vst [vmem:[%s1310_s17 + $0x358] sm:$0xff] %v757_v47  ;;  %v380_v54 = vadd.f32 3.0, %v252_v34  ;;  %v381_v55 = vadd.f32 3.0, %v253_v35  ;;  %v382_v56 = vadd.f32 3.0, %v254_v40  ;;  %v256_v57 = vld [vmem:[%s1288_s30 + $0x3b0] sm:$0xff] }
  0xbc   : > { %886 = vst [vmem:[%s1310_s17 + $0x360] sm:$0xff] %v758_v48  ;;  %v257_v58 = vld [vmem:[%s1288_s30 + $0x3b8] sm:$0xff]  ;;  %887 = vst [vmem:[%s1310_s17 + $0x368] sm:$0xff] %v759_v49  ;;  %v760_v59 = vmul.f32 0.16666667, %v632_v50  ;;  %v506_v61 = vmax.f32 %v378_v52, 0.0 }
  0xbd   : > { %v761_v60 = vmul.f32 0.16666667, %v633_v51  ;;  %v383_v62 = vadd.f32 3.0, %v255_v41  ;;  %v507_v63 = vmax.f32 %v379_v53, 0.0  ;;  %v508_v0 = vmax.f32 %v380_v54, 0.0  ;;  %v258_v7 = vld [vmem:[%s1288_s30 + $0x3c0] sm:$0xff] }
  0xbe   : > { %v509_v1 = vmax.f32 %v381_v55, 0.0  ;;  %v510_v2 = vmax.f32 %v382_v56, 0.0  ;;  %888 = vst [vmem:[%s1310_s17 + $0x370] sm:$0xff] %v760_v59  ;;  %v634_v3 = vmin.f32 %v506_v61, 6.0  ;;  %v384_v5 = vadd.f32 3.0, %v256_v57  ;;  %v259_v8 = vld [vmem:[%s1288_s30 + $0x3c8] sm:$0xff] }
  0xbf   : > { %889 = vst [vmem:[%s1310_s17 + $0x378] sm:$0xff] %v761_v60  ;;  %v511_v4 = vmax.f32 %v383_v62, 0.0  ;;  %v385_v6 = vadd.f32 3.0, %v257_v58  ;;  %v260_v9 = vld [vmem:[%s1288_s30 + $0x3d0] sm:$0xff]  ;;  %v635_v10 = vmin.f32 %v507_v63, 6.0  ;;  %v636_v11 = vmin.f32 %v508_v0, 6.0 }
  0xc0   : > { %v637_v12 = vmin.f32 %v509_v1, 6.0  ;;  %v638_v13 = vmin.f32 %v510_v2, 6.0  ;;  %v261_v14 = vld [vmem:[%s1288_s30 + $0x3d8] sm:$0xff]  ;;  %v262_v15 = vld [vmem:[%s1288_s30 + $0x3e0] sm:$0xff]  ;;  %v762_v16 = vmul.f32 0.16666667, %v634_v3 }
  0xc1   : > { %v639_v17 = vmin.f32 %v511_v4, 6.0  ;;  %v512_v18 = vmax.f32 %v384_v5, 0.0  ;;  %v513_v19 = vmax.f32 %v385_v6, 0.0  ;;  %v263_v20 = vld [vmem:[%s1288_s30 + $0x3e8] sm:$0xff]  ;;  %v763_v21 = vmul.f32 0.16666667, %v635_v10 }
  0xc2   : > { %v764_v22 = vmul.f32 0.16666667, %v636_v11  ;;  %v765_v23 = vmul.f32 0.16666667, %v637_v12  ;;  %890 = vst [vmem:[%s1310_s17 + $0x380] sm:$0xff] %v762_v16  ;;  %v386_v28 = vadd.f32 3.0, %v258_v7 }
  0xc3   : > { %v766_v24 = vmul.f32 0.16666667, %v638_v13  ;;  %v767_v25 = vmul.f32 0.16666667, %v639_v17  ;;  %v640_v26 = vmin.f32 %v512_v18, 6.0  ;;  %v641_v27 = vmin.f32 %v513_v19, 6.0 }
  0xc4   : > { %891 = vst [vmem:[%s1310_s17 + $0x388] sm:$0xff] %v763_v21  ;;  %892 = vst [vmem:[%s1310_s17 + $0x390] sm:$0xff] %v764_v22  ;;  %v387_v29 = vadd.f32 3.0, %v259_v8  ;;  %v388_v30 = vadd.f32 3.0, %v260_v9  ;;  %v389_v31 = vadd.f32 3.0, %v261_v14  ;;  %v264_v32 = vld [vmem:[%s1288_s30 + $0x3f0] sm:$0xff] }
  0xc5   : > { %893 = vst [vmem:[%s1310_s17 + $0x398] sm:$0xff] %v765_v23  ;;  %v265_v33 = vld [vmem:[%s1288_s30 + $0x3f8] sm:$0xff]  ;;  %894 = vst [vmem:[%s1310_s17 + $0x3a0] sm:$0xff] %v766_v24  ;;  %v768_v34 = vmul.f32 0.16666667, %v640_v26  ;;  %v390_v36 = vadd.f32 3.0, %v262_v15 }
  0xc6   : > { %895 = vst [vmem:[%s1310_s17 + $0x3a8] sm:$0xff] %v767_v25  ;;  %v769_v35 = vmul.f32 0.16666667, %v641_v27  ;;  %v391_v37 = vadd.f32 3.0, %v263_v20  ;;  %v514_v38 = vmax.f32 %v386_v28, 0.0  ;;  %v515_v39 = vmax.f32 %v387_v29, 0.0 }
  0xc7   : > { %v516_v40 = vmax.f32 %v388_v30, 0.0  ;;  %v517_v41 = vmax.f32 %v389_v31, 0.0  ;;  %896 = vst [vmem:[%s1310_s17 + $0x3b0] sm:$0xff] %v768_v34  ;;  %v518_v42 = vmax.f32 %v390_v36, 0.0  ;;  %v392_v44 = vadd.f32 3.0, %v264_v32  ;;  %s907_s2 = scalar_lea.sflag [#allocation4], %s1282_s23 }
  0xc8   : > { %897 = vst [vmem:[%s1310_s17 + $0x3b8] sm:$0xff] %v769_v35  ;;  %v519_v43 = vmax.f32 %v391_v37, 0.0  ;;  %v393_v45 = vadd.f32 3.0, %v265_v33  ;;  %v642_v46 = vmin.f32 %v514_v38, 6.0  ;;  %v643_v47 = vmin.f32 %v515_v39, 6.0  ;;  %s1094_s3 = scalar_lea.vmem %s1559_s27, 16384 }
  0xc9   : > { %v644_v48 = vmin.f32 %v516_v40, 6.0  ;;  %v645_v49 = vmin.f32 %v517_v41, 6.0  ;;  %v646_v50 = vmin.f32 %v518_v42, 6.0  ;;  %v520_v52 = vmax.f32 %v392_v44, 0.0  ;;  %p1095_p6 = scmp.ne.s32.totalorder %s1559_s27, %s1094_s3  ;;  %p1613_p11 = scmp.ne.s32.totalorder %s1610_s18, 0 }
  0xca   : > { %v647_v51 = vmin.f32 %v519_v43, 6.0  ;;  %v521_v53 = vmax.f32 %v393_v45, 0.0  ;;  %v770_v54 = vmul.f32 0.16666667, %v642_v46  ;;  %v771_v55 = vmul.f32 0.16666667, %v643_v47 }
  0xcb   : > { %v772_v56 = vmul.f32 0.16666667, %v644_v48  ;;  %v773_v57 = vmul.f32 0.16666667, %v645_v49  ;;  %v774_v58 = vmul.f32 0.16666667, %v646_v50  ;;  %p1096_p12 = pnand %p1095_p6, %p1613_p11 }
  0xcc   : > { %v775_v59 = vmul.f32 0.16666667, %v647_v51  ;;  %898 = vst [vmem:[%s1310_s17 + $0x3c0] sm:$0xff] %v770_v54  ;;  %899 = vst [vmem:[%s1310_s17 + $0x3c8] sm:$0xff] %v771_v55  ;;  %v648_v60 = vmin.f32 %v520_v52, 6.0  ;;  %v649_v61 = vmin.f32 %v521_v53, 6.0 }
  0xcd   : > { %900 = vst [vmem:[%s1310_s17 + $0x3d0] sm:$0xff] %v772_v56  ;;  %901 = vst [vmem:[%s1310_s17 + $0x3d8] sm:$0xff] %v773_v57  ;;  %p1097_p13 = pneg %p1096_p12  ;;  %s1165_s4 = smov [#allocation5]  }
  0xce   : > { %902 = vst [vmem:[%s1310_s17 + $0x3e0] sm:$0xff] %v774_v58  ;;  %903 = vst [vmem:[%s1310_s17 + $0x3e8] sm:$0xff] %v775_v59  ;;  %v776_v62 = vmul.f32 0.16666667, %v648_v60  ;;  %v777_v63 = vmul.f32 0.16666667, %v649_v61 }
  0xcf   : > { %s1098_s5 = sshll.u32 %s1165_s4, 4  ;;  %s1099_s5 = int_to_ptr.vmem [resolvable:$false] %s1098_s5 }
  0xd0   : > { %904 = vst [vmem:[%s1310_s17 + $0x3f0] sm:$0xff] %v776_v62  ;;  %905 = vst [vmem:[%s1310_s17 + $0x3f8] sm:$0xff] %v777_v63  ;;  %s1100_s11 = scalar_lea.vmem %s1099_s5, 32768  ;;  %p1101_p8 = scmp.lt.s32.totalorder %s1559_s27, %s1099_s5 }
  0xd1   : > { %p1102_p10 = scmp.lt.s32.totalorder %s1100_s11, %s1094_s3 }
  0xd3   : > { %p1103_p0 = por %p1102_p10, %p1101_p8 }
  0xd5   : > { %p1104_p2 = pnand %p1103_p0, %p1097_p13 }
  0xd7   : > { %1107 = shalt.err (!%p1104_p2)
}
  0xd8   : > { %s1108_s13 = scalar_lea.hbm %s1557_s29, 16384  ;;  %s1112_s20 = scalar_lea.hbm %s1606_s1, 32768 }
  0xd9   : > { %p1109_p4 = scmp.ne.s32.totalorder %s1557_s29, %s1108_s13  ;;  %p1113_p9 = scmp.lt.u32.totalorder %s1557_s29, %s1606_s1 }
  0xda   : > { %p1114_p1 = scmp.lt.u32.totalorder %s1112_s20, %s1108_s13  ;;  %p1116_p6 = scmp.lt.u32.totalorder %s1108_s13, %s1557_s29 }
  0xdb   : > { %p1110_p5 = pnand %p1109_p4, %p1613_p11 }
  0xdc   : > { %p1115_p3 = por %p1114_p1, %p1113_p9 }
  0xdd   : > { %p1111_p7 = pneg %p1110_p5 }
  0xde   : > { %p1117_p12 = por %p1116_p6, %p1115_p3 }
  0xe0   : > { %p1118_p13 = pnand %p1117_p12, %p1111_p7 }
  0xe2   : > { %1121 = shalt.err (!%p1118_p13)
}
  0xe3   : > { %s1166_s24 = smov 1024   ;;  %s1167_s26 = smov 64  }
  0xe4   : > { %1016 = dma.vmem_to_hbm [thread:$0]  (%p1613_p11), %s1559_s27, 16384, %s1557_s29, %s907_s2, %s1166_s24, %s1166_s24, %s1167_s26  }
  0xe5 PF: > { %s936_s30 = sand.u32 1, %s1148_s6   ;;  %p1614_p8 = scmp.ne.s32.totalorder %s1611_s19, 0 }
  0xe6   : > { %p1615_p10 = scmp.ge.s32.totalorder %s1160_s9, 2  ;;  %s937_s17 = scalar_lea.sflag [#allocation4], %s936_s30 }
  0xe8   : > { %p1023_p0 = pnand %p1615_p10, %p1614_p8 }
  0xea   : > { %1143 = dma.done.wait (!%p1023_p0), %s937_s17, 16384  }
  0xeb   : > { %1145 = vsyncadd (!%p1023_p0), %s937_s17, 4294950912  ;;  %p14_p2 = scmp.ge.s32.totalorder %s1203_s12, 4   ;;  %s1616_s6 = smov %s1152_s7 }
  0xec   : > { %s1617_s7 = smov %s1156_s8  ;;  %s1618_s8 = smov %s1215_s15 }
  0xed   : > { %s1619_s9 = smov %s1203_s12  ;;  %16 = sbr.rel (!%p14_p2) target bundleno = 5 (0x5), region = 69 }
  0xf4   :  { %942 = vsyncpa [#allocation3], 1 }
  0xf5   :  { %944 = vsyncpa [#allocation3 + $0x1], 1 }
  0xf6   :  { %945 = vsyncpa [#allocation4], 1 }
  0xf7   :  { %947 = vsyncpa [#allocation4 + $0x1], 1 }

</bundles_post_ra>
